<compile_context>
chip_gen: v7x
topology: tpu7x:2x2x1
jax: 0.10.0
libtpu: 0.0.40
codegen_flags: <defaults>
</compile_context>

<pallas_src>
import jax
import jax.numpy as jnp
from jax import lax
from jax.experimental import pallas as pl
from jax.experimental.pallas import tpu as pltpu


def fused_embed_lstm_dense_softmax_kernel(ids_ref, t_ref, whh_ref, wd_ref,
                                          b_d_ref, out_ref):
    SBp = ids_ref.shape[0]          # S * Bp (time-major rows, batch padded)
    F = t_ref.shape[0]              # vocab size == embedding dim
    H = whh_ref.shape[0]            # LSTM hidden size
    Bp = out_ref.shape[0]           # padded batch (multiple of 8 sublanes)
    S = SBp // Bp

    # ---- Embedding gather + input projection + bias as ONE matmul.
    # T = emb @ W_ih^T + (b_ih + b_hh) is precomputed on host; a one-hot row
    # selects exactly one row of T, so folding the bias into T is exact.
    ids = ids_ref[...]                                               # (S*Bp, 1) int32
    one_hot = (ids == lax.broadcasted_iota(jnp.int32, (SBp, F), 1)
               ).astype(jnp.bfloat16)                                # (S*Bp, F)
    gates_x = jnp.dot(one_hot, t_ref[...],
                      preferred_element_type=jnp.float32)            # (S*Bp, 4H) f32

    whh = whh_ref[...]                                               # (H, 4H) bf16
    h = jnp.zeros((Bp, H), jnp.float32)
    c = jnp.zeros((Bp, H), jnp.float32)

    # ---- LSTM recurrence (PyTorch gate order: i, f, g, o).  S=8 -> static
    # unroll is fine; for larger S switch to lax.fori_loop(..., unroll=True).
    for t in range(S):
        g = gates_x[t * Bp:(t + 1) * Bp, :] + jnp.dot(
            h.astype(jnp.bfloat16), whh,
            preferred_element_type=jnp.float32)                      # (Bp, 4H) f32
        # Full-vreg EUP ops (one sigmoid, one tanh over all 4H=128 lanes),
        # then 32-lane selects; gate math stays f32.
        sg = jax.nn.sigmoid(g)
        tg = jnp.tanh(g)
        i_g = sg[:, 0 * H:1 * H]
        f_g = sg[:, 1 * H:2 * H]
        g_g = tg[:, 2 * H:3 * H]
        o_g = sg[:, 3 * H:4 * H]
        c = f_g * c + i_g * g_g
        h = o_g * jnp.tanh(c)

    # ---- Dense on last hidden state + exact softmax over features (dim=1).
    logits = jnp.dot(h.astype(jnp.bfloat16), wd_ref[...],
                     preferred_element_type=jnp.float32) + b_d_ref[...]   # (Bp, F)
    m = jnp.max(logits, axis=1, keepdims=True)
    e = jnp.exp(logits - m)
    out_ref[...] = e / jnp.sum(e, axis=1, keepdims=True)


def pytorch_model_forward(x_ids, params):
    """x_ids: (B, S) int32 token ids. Returns (B, F) softmax probabilities."""
    t_fused = params["t_fused"]        # (F, 4H) bf16  (emb @ W_ih^T + b_ih + b_hh)
    w_hh_t = params["w_hh_t"]          # (H, 4H) bf16
    w_d_t = params["w_d_t"]            # (H, F)  bf16
    b_d = params["b_d"]                # (1, F)  f32

    B, S = x_ids.shape
    F = t_fused.shape[0]
    Bp = max(8, ((B + 7) // 8) * 8)    # pad batch to a full f32 sublane tile

    # Tiny host-side glue on the int ids only: pad batch, time-major flatten.
    ids_p = jnp.zeros((Bp, S), jnp.int32).at[:B, :].set(x_ids.astype(jnp.int32))
    ids_col = ids_p.T.reshape(S * Bp, 1)          # row index = s*Bp + b

    vmem = pl.BlockSpec(memory_space=pltpu.MemorySpace.VMEM)
    out_p = pl.pallas_call(
        fused_embed_lstm_dense_softmax_kernel,
        out_shape=jax.ShapeDtypeStruct((Bp, F), jnp.float32),
        in_specs=[vmem] * 5,
        out_specs=vmem,
    )(ids_col, t_fused, w_hh_t, w_d_t, b_d)
    return out_p[:B]                   # drop padded batch rows


def init_params(key, num_features, latent_dim):
    F, H = num_features, latent_dim
    ks = jax.random.split(key, 7)
    scale = 0.1
    emb = scale * jax.random.normal(ks[0], (F, F), jnp.float32)
    w_ih = scale * jax.random.normal(ks[1], (4 * H, F), jnp.float32)
    w_hh = scale * jax.random.normal(ks[2], (4 * H, H), jnp.float32)
    b_ih = scale * jax.random.normal(ks[3], (4 * H,), jnp.float32)
    b_hh = scale * jax.random.normal(ks[4], (4 * H,), jnp.float32)
    w_d = scale * jax.random.normal(ks[5], (F, H), jnp.float32)
    b_d = scale * jax.random.normal(ks[6], (F,), jnp.float32)
    # Fuse embedding + input projection + both LSTM biases into one table
    # (computed in f32, stored bf16 for single-pass MXU operands).
    t_fused = (emb @ w_ih.T + (b_ih + b_hh)[None, :]).astype(jnp.bfloat16)
    return {
        "t_fused": t_fused,                         # (F, 4H) bf16
        "w_hh_t": w_hh.T.astype(jnp.bfloat16),      # (H, 4H) bf16
        "w_d_t": w_d.T.astype(jnp.bfloat16),        # (H, F)  bf16
        "b_d": b_d[None, :],                        # (1, F)  f32
    }


if __name__ == "__main__":
    num_features = 16   # vocab size == embedding dim
    latent_dim = 32     # LSTM hidden size
    seq_len = 8
    batch = 2

    key = jax.random.PRNGKey(0)
    pkey, xkey = jax.random.split(key)
    params = init_params(pkey, num_features, latent_dim)
    x_ids = jax.random.randint(xkey, (batch, seq_len), 0, num_features,
                               dtype=jnp.int32)

    # TODO(synk): nn.LSTM(dropout=0.2) with num_layers=1 is a no-op at inference; omitted.
    out = pytorch_model_forward(x_ids, params)
    jax.block_until_ready(out)
    assert out.shape == (batch, num_features)
    # Exact softmax division in-kernel: rows must sum to ~1.
    assert bool(jnp.allclose(jnp.sum(out, axis=1), 1.0, atol=1e-3))
    print("KERNEL_OK")
</pallas_src>

<mosaic_0001>
module attributes {stable_mosaic.version = 11 : i64} {
  func.func @fused_embed_lstm_dense_softmax_kernel(%arg0: memref<64x1xi32, #tpu.memory_space<vmem>>, %arg1: memref<16x128xbf16, #tpu.memory_space<vmem>>, %arg2: memref<32x128xbf16, #tpu.memory_space<vmem>>, %arg3: memref<32x16xbf16, #tpu.memory_space<vmem>>, %arg4: memref<1x16xf32, #tpu.memory_space<vmem>>, %arg5: memref<8x16xf32, #tpu.memory_space<vmem>>) attributes {dimension_semantics = [], scalar_prefetch = 0 : i64, scratch_operands = 0 : i64, tpu.core_type = #tpu.core_type<tc>} {
    %c0 = arith.constant 0 : index
    %c0_0 = arith.constant 0 : index
    %0 = vector.load %arg0[%c0, %c0_0] : memref<64x1xi32, #tpu.memory_space<vmem>>, vector<64x1xi32>
    %1 = tpu.iota {dimensions = array<i32: 1>} : vector<64x16xi32>
    %2 = vector.broadcast %0 : vector<64x1xi32> to vector<64x16xi32>
    %3 = arith.cmpi eq, %2, %1 : vector<64x16xi32>
    %4 = arith.extui %3 : vector<64x16xi1> to vector<64x16xi32>
    %5 = arith.sitofp %4 : vector<64x16xi32> to vector<64x16xf32>
    %6 = arith.truncf %5 : vector<64x16xf32> to vector<64x16xbf16>
    %c0_1 = arith.constant 0 : index
    %c0_2 = arith.constant 0 : index
    %7 = vector.load %arg1[%c0_1, %c0_2] : memref<16x128xbf16, #tpu.memory_space<vmem>>, vector<16x128xbf16>
    %cst = arith.constant dense<0.000000e+00> : vector<64x128xf32>
    %8 = tpu.matmul %6, %7, %cst {dimension_numbers = #tpu.dot_dimension_numbers<[1], [0], [0], [1], [0, 0, 1, 1], [], []>} : vector<64x16xbf16>, vector<16x128xbf16>, vector<64x128xf32> -> vector<64x128xf32>
    %c0_3 = arith.constant 0 : index
    %c0_4 = arith.constant 0 : index
    %9 = vector.load %arg2[%c0_3, %c0_4] : memref<32x128xbf16, #tpu.memory_space<vmem>>, vector<32x128xbf16>
    %cst_5 = arith.constant 0.000000e+00 : f32
    %10 = vector.broadcast %cst_5 : f32 to vector<8x32xf32>
    %cst_6 = arith.constant 0.000000e+00 : f32
    %11 = vector.broadcast %cst_6 : f32 to vector<8x32xf32>
    %12 = vector.extract_strided_slice %8 {offsets = [0, 0], sizes = [8, 128], strides = [1, 1]} : vector<64x128xf32> to vector<8x128xf32>
    %13 = arith.truncf %10 : vector<8x32xf32> to vector<8x32xbf16>
    %cst_7 = arith.constant dense<0.000000e+00> : vector<8x128xf32>
    %14 = tpu.matmul %13, %9, %cst_7 {dimension_numbers = #tpu.dot_dimension_numbers<[1], [0], [0], [1], [0, 0, 1, 1], [], []>} : vector<8x32xbf16>, vector<32x128xbf16>, vector<8x128xf32> -> vector<8x128xf32>
    %15 = arith.addf %12, %14 : vector<8x128xf32>
    %16 = arith.negf %15 : vector<8x128xf32>
    %17 = math.exp %16 : vector<8x128xf32>
    %cst_8 = arith.constant 1.000000e+00 : f32
    %18 = vector.broadcast %cst_8 : f32 to vector<8x128xf32>
    %19 = arith.addf %18, %17 : vector<8x128xf32>
    %20 = arith.divf %18, %19 : vector<8x128xf32>
    %21 = math.tanh %15 : vector<8x128xf32>
    %22 = vector.extract_strided_slice %20 {offsets = [0, 0], sizes = [8, 32], strides = [1, 1]} : vector<8x128xf32> to vector<8x32xf32>
    %23 = vector.extract_strided_slice %20 {offsets = [0, 32], sizes = [8, 32], strides = [1, 1]} : vector<8x128xf32> to vector<8x32xf32>
    %24 = vector.extract_strided_slice %21 {offsets = [0, 64], sizes = [8, 32], strides = [1, 1]} : vector<8x128xf32> to vector<8x32xf32>
    %25 = vector.extract_strided_slice %20 {offsets = [0, 96], sizes = [8, 32], strides = [1, 1]} : vector<8x128xf32> to vector<8x32xf32>
    %26 = arith.mulf %23, %11 : vector<8x32xf32>
    %27 = arith.mulf %22, %24 : vector<8x32xf32>
    %28 = arith.addf %26, %27 : vector<8x32xf32>
    %29 = math.tanh %28 : vector<8x32xf32>
    %30 = arith.mulf %25, %29 : vector<8x32xf32>
    %31 = vector.extract_strided_slice %8 {offsets = [8, 0], sizes = [8, 128], strides = [1, 1]} : vector<64x128xf32> to vector<8x128xf32>
    %32 = arith.truncf %30 : vector<8x32xf32> to vector<8x32xbf16>
    %cst_9 = arith.constant dense<0.000000e+00> : vector<8x128xf32>
    %33 = tpu.matmul %32, %9, %cst_9 {dimension_numbers = #tpu.dot_dimension_numbers<[1], [0], [0], [1], [0, 0, 1, 1], [], []>} : vector<8x32xbf16>, vector<32x128xbf16>, vector<8x128xf32> -> vector<8x128xf32>
    %34 = arith.addf %31, %33 : vector<8x128xf32>
    %35 = arith.negf %34 : vector<8x128xf32>
    %36 = math.exp %35 : vector<8x128xf32>
    %cst_10 = arith.constant 1.000000e+00 : f32
    %37 = vector.broadcast %cst_10 : f32 to vector<8x128xf32>
    %38 = arith.addf %37, %36 : vector<8x128xf32>
    %39 = arith.divf %37, %38 : vector<8x128xf32>
    %40 = math.tanh %34 : vector<8x128xf32>
    %41 = vector.extract_strided_slice %39 {offsets = [0, 0], sizes = [8, 32], strides = [1, 1]} : vector<8x128xf32> to vector<8x32xf32>
    %42 = vector.extract_strided_slice %39 {offsets = [0, 32], sizes = [8, 32], strides = [1, 1]} : vector<8x128xf32> to vector<8x32xf32>
    %43 = vector.extract_strided_slice %40 {offsets = [0, 64], sizes = [8, 32], strides = [1, 1]} : vector<8x128xf32> to vector<8x32xf32>
    %44 = vector.extract_strided_slice %39 {offsets = [0, 96], sizes = [8, 32], strides = [1, 1]} : vector<8x128xf32> to vector<8x32xf32>
    %45 = arith.mulf %42, %28 : vector<8x32xf32>
    %46 = arith.mulf %41, %43 : vector<8x32xf32>
    %47 = arith.addf %45, %46 : vector<8x32xf32>
    %48 = math.tanh %47 : vector<8x32xf32>
    %49 = arith.mulf %44, %48 : vector<8x32xf32>
    %50 = vector.extract_strided_slice %8 {offsets = [16, 0], sizes = [8, 128], strides = [1, 1]} : vector<64x128xf32> to vector<8x128xf32>
    %51 = arith.truncf %49 : vector<8x32xf32> to vector<8x32xbf16>
    %cst_11 = arith.constant dense<0.000000e+00> : vector<8x128xf32>
    %52 = tpu.matmul %51, %9, %cst_11 {dimension_numbers = #tpu.dot_dimension_numbers<[1], [0], [0], [1], [0, 0, 1, 1], [], []>} : vector<8x32xbf16>, vector<32x128xbf16>, vector<8x128xf32> -> vector<8x128xf32>
    %53 = arith.addf %50, %52 : vector<8x128xf32>
    %54 = arith.negf %53 : vector<8x128xf32>
    %55 = math.exp %54 : vector<8x128xf32>
    %cst_12 = arith.constant 1.000000e+00 : f32
    %56 = vector.broadcast %cst_12 : f32 to vector<8x128xf32>
    %57 = arith.addf %56, %55 : vector<8x128xf32>
    %58 = arith.divf %56, %57 : vector<8x128xf32>
    %59 = math.tanh %53 : vector<8x128xf32>
    %60 = vector.extract_strided_slice %58 {offsets = [0, 0], sizes = [8, 32], strides = [1, 1]} : vector<8x128xf32> to vector<8x32xf32>
    %61 = vector.extract_strided_slice %58 {offsets = [0, 32], sizes = [8, 32], strides = [1, 1]} : vector<8x128xf32> to vector<8x32xf32>
    %62 = vector.extract_strided_slice %59 {offsets = [0, 64], sizes = [8, 32], strides = [1, 1]} : vector<8x128xf32> to vector<8x32xf32>
    %63 = vector.extract_strided_slice %58 {offsets = [0, 96], sizes = [8, 32], strides = [1, 1]} : vector<8x128xf32> to vector<8x32xf32>
    %64 = arith.mulf %61, %47 : vector<8x32xf32>
    %65 = arith.mulf %60, %62 : vector<8x32xf32>
    %66 = arith.addf %64, %65 : vector<8x32xf32>
    %67 = math.tanh %66 : vector<8x32xf32>
    %68 = arith.mulf %63, %67 : vector<8x32xf32>
    %69 = vector.extract_strided_slice %8 {offsets = [24, 0], sizes = [8, 128], strides = [1, 1]} : vector<64x128xf32> to vector<8x128xf32>
    %70 = arith.truncf %68 : vector<8x32xf32> to vector<8x32xbf16>
    %cst_13 = arith.constant dense<0.000000e+00> : vector<8x128xf32>
    %71 = tpu.matmul %70, %9, %cst_13 {dimension_numbers = #tpu.dot_dimension_numbers<[1], [0], [0], [1], [0, 0, 1, 1], [], []>} : vector<8x32xbf16>, vector<32x128xbf16>, vector<8x128xf32> -> vector<8x128xf32>
    %72 = arith.addf %69, %71 : vector<8x128xf32>
    %73 = arith.negf %72 : vector<8x128xf32>
    %74 = math.exp %73 : vector<8x128xf32>
    %cst_14 = arith.constant 1.000000e+00 : f32
    %75 = vector.broadcast %cst_14 : f32 to vector<8x128xf32>
    %76 = arith.addf %75, %74 : vector<8x128xf32>
    %77 = arith.divf %75, %76 : vector<8x128xf32>
    %78 = math.tanh %72 : vector<8x128xf32>
    %79 = vector.extract_strided_slice %77 {offsets = [0, 0], sizes = [8, 32], strides = [1, 1]} : vector<8x128xf32> to vector<8x32xf32>
    %80 = vector.extract_strided_slice %77 {offsets = [0, 32], sizes = [8, 32], strides = [1, 1]} : vector<8x128xf32> to vector<8x32xf32>
    %81 = vector.extract_strided_slice %78 {offsets = [0, 64], sizes = [8, 32], strides = [1, 1]} : vector<8x128xf32> to vector<8x32xf32>
    %82 = vector.extract_strided_slice %77 {offsets = [0, 96], sizes = [8, 32], strides = [1, 1]} : vector<8x128xf32> to vector<8x32xf32>
    %83 = arith.mulf %80, %66 : vector<8x32xf32>
    %84 = arith.mulf %79, %81 : vector<8x32xf32>
    %85 = arith.addf %83, %84 : vector<8x32xf32>
    %86 = math.tanh %85 : vector<8x32xf32>
    %87 = arith.mulf %82, %86 : vector<8x32xf32>
    %88 = vector.extract_strided_slice %8 {offsets = [32, 0], sizes = [8, 128], strides = [1, 1]} : vector<64x128xf32> to vector<8x128xf32>
    %89 = arith.truncf %87 : vector<8x32xf32> to vector<8x32xbf16>
    %cst_15 = arith.constant dense<0.000000e+00> : vector<8x128xf32>
    %90 = tpu.matmul %89, %9, %cst_15 {dimension_numbers = #tpu.dot_dimension_numbers<[1], [0], [0], [1], [0, 0, 1, 1], [], []>} : vector<8x32xbf16>, vector<32x128xbf16>, vector<8x128xf32> -> vector<8x128xf32>
    %91 = arith.addf %88, %90 : vector<8x128xf32>
    %92 = arith.negf %91 : vector<8x128xf32>
    %93 = math.exp %92 : vector<8x128xf32>
    %cst_16 = arith.constant 1.000000e+00 : f32
    %94 = vector.broadcast %cst_16 : f32 to vector<8x128xf32>
    %95 = arith.addf %94, %93 : vector<8x128xf32>
    %96 = arith.divf %94, %95 : vector<8x128xf32>
    %97 = math.tanh %91 : vector<8x128xf32>
    %98 = vector.extract_strided_slice %96 {offsets = [0, 0], sizes = [8, 32], strides = [1, 1]} : vector<8x128xf32> to vector<8x32xf32>
    %99 = vector.extract_strided_slice %96 {offsets = [0, 32], sizes = [8, 32], strides = [1, 1]} : vector<8x128xf32> to vector<8x32xf32>
    %100 = vector.extract_strided_slice %97 {offsets = [0, 64], sizes = [8, 32], strides = [1, 1]} : vector<8x128xf32> to vector<8x32xf32>
    %101 = vector.extract_strided_slice %96 {offsets = [0, 96], sizes = [8, 32], strides = [1, 1]} : vector<8x128xf32> to vector<8x32xf32>
    %102 = arith.mulf %99, %85 : vector<8x32xf32>
    %103 = arith.mulf %98, %100 : vector<8x32xf32>
    %104 = arith.addf %102, %103 : vector<8x32xf32>
    %105 = math.tanh %104 : vector<8x32xf32>
    %106 = arith.mulf %101, %105 : vector<8x32xf32>
    %107 = vector.extract_strided_slice %8 {offsets = [40, 0], sizes = [8, 128], strides = [1, 1]} : vector<64x128xf32> to vector<8x128xf32>
    %108 = arith.truncf %106 : vector<8x32xf32> to vector<8x32xbf16>
    %cst_17 = arith.constant dense<0.000000e+00> : vector<8x128xf32>
    %109 = tpu.matmul %108, %9, %cst_17 {dimension_numbers = #tpu.dot_dimension_numbers<[1], [0], [0], [1], [0, 0, 1, 1], [], []>} : vector<8x32xbf16>, vector<32x128xbf16>, vector<8x128xf32> -> vector<8x128xf32>
    %110 = arith.addf %107, %109 : vector<8x128xf32>
    %111 = arith.negf %110 : vector<8x128xf32>
    %112 = math.exp %111 : vector<8x128xf32>
    %cst_18 = arith.constant 1.000000e+00 : f32
    %113 = vector.broadcast %cst_18 : f32 to vector<8x128xf32>
    %114 = arith.addf %113, %112 : vector<8x128xf32>
    %115 = arith.divf %113, %114 : vector<8x128xf32>
    %116 = math.tanh %110 : vector<8x128xf32>
    %117 = vector.extract_strided_slice %115 {offsets = [0, 0], sizes = [8, 32], strides = [1, 1]} : vector<8x128xf32> to vector<8x32xf32>
    %118 = vector.extract_strided_slice %115 {offsets = [0, 32], sizes = [8, 32], strides = [1, 1]} : vector<8x128xf32> to vector<8x32xf32>
    %119 = vector.extract_strided_slice %116 {offsets = [0, 64], sizes = [8, 32], strides = [1, 1]} : vector<8x128xf32> to vector<8x32xf32>
    %120 = vector.extract_strided_slice %115 {offsets = [0, 96], sizes = [8, 32], strides = [1, 1]} : vector<8x128xf32> to vector<8x32xf32>
    %121 = arith.mulf %118, %104 : vector<8x32xf32>
    %122 = arith.mulf %117, %119 : vector<8x32xf32>
    %123 = arith.addf %121, %122 : vector<8x32xf32>
    %124 = math.tanh %123 : vector<8x32xf32>
    %125 = arith.mulf %120, %124 : vector<8x32xf32>
    %126 = vector.extract_strided_slice %8 {offsets = [48, 0], sizes = [8, 128], strides = [1, 1]} : vector<64x128xf32> to vector<8x128xf32>
    %127 = arith.truncf %125 : vector<8x32xf32> to vector<8x32xbf16>
    %cst_19 = arith.constant dense<0.000000e+00> : vector<8x128xf32>
    %128 = tpu.matmul %127, %9, %cst_19 {dimension_numbers = #tpu.dot_dimension_numbers<[1], [0], [0], [1], [0, 0, 1, 1], [], []>} : vector<8x32xbf16>, vector<32x128xbf16>, vector<8x128xf32> -> vector<8x128xf32>
    %129 = arith.addf %126, %128 : vector<8x128xf32>
    %130 = arith.negf %129 : vector<8x128xf32>
    %131 = math.exp %130 : vector<8x128xf32>
    %cst_20 = arith.constant 1.000000e+00 : f32
    %132 = vector.broadcast %cst_20 : f32 to vector<8x128xf32>
    %133 = arith.addf %132, %131 : vector<8x128xf32>
    %134 = arith.divf %132, %133 : vector<8x128xf32>
    %135 = math.tanh %129 : vector<8x128xf32>
    %136 = vector.extract_strided_slice %134 {offsets = [0, 0], sizes = [8, 32], strides = [1, 1]} : vector<8x128xf32> to vector<8x32xf32>
    %137 = vector.extract_strided_slice %134 {offsets = [0, 32], sizes = [8, 32], strides = [1, 1]} : vector<8x128xf32> to vector<8x32xf32>
    %138 = vector.extract_strided_slice %135 {offsets = [0, 64], sizes = [8, 32], strides = [1, 1]} : vector<8x128xf32> to vector<8x32xf32>
    %139 = vector.extract_strided_slice %134 {offsets = [0, 96], sizes = [8, 32], strides = [1, 1]} : vector<8x128xf32> to vector<8x32xf32>
    %140 = arith.mulf %137, %123 : vector<8x32xf32>
    %141 = arith.mulf %136, %138 : vector<8x32xf32>
    %142 = arith.addf %140, %141 : vector<8x32xf32>
    %143 = math.tanh %142 : vector<8x32xf32>
    %144 = arith.mulf %139, %143 : vector<8x32xf32>
    %145 = vector.extract_strided_slice %8 {offsets = [56, 0], sizes = [8, 128], strides = [1, 1]} : vector<64x128xf32> to vector<8x128xf32>
    %146 = arith.truncf %144 : vector<8x32xf32> to vector<8x32xbf16>
    %cst_21 = arith.constant dense<0.000000e+00> : vector<8x128xf32>
    %147 = tpu.matmul %146, %9, %cst_21 {dimension_numbers = #tpu.dot_dimension_numbers<[1], [0], [0], [1], [0, 0, 1, 1], [], []>} : vector<8x32xbf16>, vector<32x128xbf16>, vector<8x128xf32> -> vector<8x128xf32>
    %148 = arith.addf %145, %147 : vector<8x128xf32>
    %149 = arith.negf %148 : vector<8x128xf32>
    %150 = math.exp %149 : vector<8x128xf32>
    %cst_22 = arith.constant 1.000000e+00 : f32
    %151 = vector.broadcast %cst_22 : f32 to vector<8x128xf32>
    %152 = arith.addf %151, %150 : vector<8x128xf32>
    %153 = arith.divf %151, %152 : vector<8x128xf32>
    %154 = math.tanh %148 : vector<8x128xf32>
    %155 = vector.extract_strided_slice %153 {offsets = [0, 0], sizes = [8, 32], strides = [1, 1]} : vector<8x128xf32> to vector<8x32xf32>
    %156 = vector.extract_strided_slice %153 {offsets = [0, 32], sizes = [8, 32], strides = [1, 1]} : vector<8x128xf32> to vector<8x32xf32>
    %157 = vector.extract_strided_slice %154 {offsets = [0, 64], sizes = [8, 32], strides = [1, 1]} : vector<8x128xf32> to vector<8x32xf32>
    %158 = vector.extract_strided_slice %153 {offsets = [0, 96], sizes = [8, 32], strides = [1, 1]} : vector<8x128xf32> to vector<8x32xf32>
    %159 = arith.mulf %156, %142 : vector<8x32xf32>
    %160 = arith.mulf %155, %157 : vector<8x32xf32>
    %161 = arith.addf %159, %160 : vector<8x32xf32>
    %162 = math.tanh %161 : vector<8x32xf32>
    %163 = arith.mulf %158, %162 : vector<8x32xf32>
    %164 = arith.truncf %163 : vector<8x32xf32> to vector<8x32xbf16>
    %c0_23 = arith.constant 0 : index
    %c0_24 = arith.constant 0 : index
    %165 = vector.load %arg3[%c0_23, %c0_24] : memref<32x16xbf16, #tpu.memory_space<vmem>>, vector<32x16xbf16>
    %cst_25 = arith.constant dense<0.000000e+00> : vector<8x16xf32>
    %166 = tpu.matmul %164, %165, %cst_25 {dimension_numbers = #tpu.dot_dimension_numbers<[1], [0], [0], [1], [0, 0, 1, 1], [], []>} : vector<8x32xbf16>, vector<32x16xbf16>, vector<8x16xf32> -> vector<8x16xf32>
    %c0_26 = arith.constant 0 : index
    %c0_27 = arith.constant 0 : index
    %167 = vector.load %arg4[%c0_26, %c0_27] : memref<1x16xf32, #tpu.memory_space<vmem>>, vector<1x16xf32>
    %168 = vector.broadcast %167 : vector<1x16xf32> to vector<8x16xf32>
    %169 = arith.addf %166, %168 : vector<8x16xf32>
    %cst_28 = arith.constant dense<0xFF800000> : vector<8xf32>
    %170 = vector.multi_reduction <maximumf>, %169, %cst_28 [1] : vector<8x16xf32> to vector<8xf32>
    %171 = vector.shape_cast %170 : vector<8xf32> to vector<8x1xf32>
    %172 = vector.broadcast %171 : vector<8x1xf32> to vector<8x16xf32>
    %173 = arith.subf %169, %172 : vector<8x16xf32>
    %174 = math.exp %173 : vector<8x16xf32>
    %cst_29 = arith.constant dense<0.000000e+00> : vector<8xf32>
    %175 = vector.multi_reduction <add>, %174, %cst_29 [1] : vector<8x16xf32> to vector<8xf32>
    %176 = vector.shape_cast %175 : vector<8xf32> to vector<8x1xf32>
    %177 = vector.broadcast %176 : vector<8x1xf32> to vector<8x16xf32>
    %178 = arith.divf %174, %177 : vector<8x16xf32>
    %c0_30 = arith.constant 0 : index
    %c0_31 = arith.constant 0 : index
    %179 = vector.load %arg5[%c0_30, %c0_31] : memref<8x16xf32, #tpu.memory_space<vmem>>, vector<8x16xf32>
    tpu.vector_store %arg5[%c0_30, %c0_31], %178 {strides = array<i32>} : memref<8x16xf32, #tpu.memory_space<vmem>>, vector<8x16xf32>,
    return
  }
}

</mosaic_0001>

<bundles_post_ra>
// kernel: tpu_custom_call.1
= control target key start
LH: loop header
LB: loop body
LE: loop exit
PB: predicated region body
PF: predicated region fallthrough
CT: control target
= control target key end

     0   :  { %v1108_v2 = vmov 0   ;;  %v1109_v6 = vmov 0.0   ;;  %s1337_s0 = inlined_call_operand.vmem [shape: s32[64,1], index: 0, kind: input, shape index: {}]   ;;  %s1338_s1 = inlined_call_operand.vmem [shape: bf16[16,128], index: 1, kind: input, shape index: {}]   ;;  %s1339_s2 = inlined_call_operand.vmem [shape: bf16[32,128], index: 2, kind: input, shape index: {}]   ;;  %s1340_s3 = inlined_call_operand.vmem [shape: bf16[32,16], index: 3, kind: input, shape index: {}]   ;;  %s1341_s4 = inlined_call_operand.vmem [shape: f32[1,16], index: 4, kind: input, shape index: {}]   ;;  %s1342_s5 = inlined_call_operand.hbm [shape: f32[8,16], index: 5, kind: output, shape index: {}]  }
   0x1   :  { %v24_v0 = vld [vmem:[%s1337_s0 + $0x10] sm:$0xff]  ;;  %v22_v1 = vld [vmem:[%s1337_s0] sm:$0xff]  ;;  %1010 = vset.pattern.permute.xlu1 %v1108_v2  ;;  %1009 = vset.pattern.permute.xlu0 %v1108_v2  ;;  %v25_v3 = vld [vmem:[%s1337_s0 + $0x18] sm:$0xff] }
   0x2   :  { %v23_v4 = vld [vmem:[%s1337_s0 + $0x8] sm:$0xff]  ;;  %39 = vperm.xlu1 %1010, %v24_v0   ;;  %33 = vperm.xlu0 %1009, %v22_v1   ;;  %v1159_v5 = vld [vmem:[%s1339_s2] sm:$0xff]  }
   0x3   :  { %931 = vmatprep.subr.bf16.mxu1 %v1109_v6  ;;  %v1166_v7 = vld [vmem:[%s1339_s2 + $0x8] sm:$0xff]   ;;  %v1013_v8 = vld [vmem:[%s1338_s1] sm:$0xff]  }
   0x4   :  { %932 = vmatpush3.bf16.msra.mxu1 %v1159_v5 }
   0x5   :  { %933 = vmatprep.subr.bf16.mxu1 %v1109_v6 }
   0x6   :  { %10 = vsyncpa [#allocation3], 0  ;;  %42 = vperm.xlu1 %1010, %v25_v3   ;;  %36 = vperm.xlu0 %1009, %v23_v4   ;;  %vm1110_vm0 = vmmov 0   ;;  %v30_v9 = vlaneseq  ;;  %vm92_vm5 = vcmask 130048   ;;  %s1111_s1 = smov 64   ;;  %s1112_s2 = smov 32  }
   0x7   :  { %921 = vmatprep.subr.bf16.mxu0 %v1013_v8  ;;  %935 = vmatprep.mubr.msk.bf16.mxu1 %vm1110_vm0, %v1109_v6  ;;  %vm186_vm6 = vcmask 261120   ;;  %v26_v57 = vld [vmem:[%s1337_s0 + $0x20] sm:$0xff]  ;;  %v28_v58 = vld [vmem:[%s1337_s0 + $0x30] sm:$0xff]  ;;  %v27_v63 = vld [vmem:[%s1337_s0 + $0x28] sm:$0xff] }
   0x8   :  { %934 = vmatpush3.bf16.msra.mxu1 %v1166_v7  ;;  %922 = vmatpush3.bf16.msra.mxu0 %v1013_v8  ;;  %v1183_v10 = vand.u32 127, %v30_v9  ;;  %v29_v0 = vld [vmem:[%s1337_s0 + $0x38] sm:$0xff] }
   0x9   :  { %939 = vmatprep.subr.bf16.mxu1 %v1109_v6  ;;  %947 = vmatprep.subr.bf16.mxu0 %v1109_v6 }
   0xb   :  { %936 = vmatmul.mubr.bf16.vlgmr.msra.gmra.mrb[0].mxu1 %v1108_v2 }
   0xc   :  { %940 = vmatpush3.bf16.msra.mxu1 %v1159_v5  ;;  %943 = vmatprep.mubr.msk.bf16.mxu1 %vm1110_vm0, %v1109_v6 }
   0xd   :  { %941 = vmatprep.subr.bf16.mxu1 %v1109_v6 }
  0x10   :  { %942 = vmatpush3.bf16.msra.mxu1 %v1166_v7 }
  0x11   :  { %955 = vmatprep.subr.bf16.mxu1 %v1109_v6 }
  0x81   :  { %v40_v11 = vpop.permute.xlu1 %39  ;;  %v34_v12 = vpop.permute.xlu0 %33 }
  0x82   :  { %vm58_vm1 = vcmp.eq.s32.totalorder %v40_v11, %v1183_v10  ;;  %vm56_vm2 = vcmp.eq.s32.totalorder %v34_v12, %v1183_v10 }
  0x83   :  { %v857_v15 = vsel %vm58_vm1, 1.0, %v1109_v6  ;;  %v855_v16 = vsel %vm56_vm2, 1.0, %v1109_v6 }
  0x85   :  { %v43_v13 = vpop.permute.xlu1 %42  ;;  %v37_v14 = vpop.permute.xlu0 %36 }
  0x86   :  { %vm59_vm3 = vcmp.eq.s32.totalorder %v43_v13, %v1183_v10  ;;  %vm57_vm4 = vcmp.eq.s32.totalorder %v37_v14, %v1183_v10 }
  0x87   :  { %v858_v17 = vsel %vm59_vm3, 1.0, %v1109_v6  ;;  %v856_v18 = vsel %vm57_vm4, 1.0, %v1109_v6 }
  0x88   :  { %v81_v19 = vpack.c.bf16 %v858_v17, %v857_v15  ;;  %v80_v20 = vpack.c.bf16 %v856_v18, %v855_v16 }
  0x8a   :  { %923 = vmatprep.mubr.msk.bf16.mxu0 %vm92_vm5, %v80_v20 }
  0x8b   :  { %924 = vmatmul.mubr.msk.bf16.vlgmr.msra.gmra.mrb[0].mxu0 %vm92_vm5, %v81_v19 }
  0x8c   :  { %948 = vmatpush3.bf16.msra.mxu0 %v1159_v5 }
  0x8d   :  { %949 = vmatprep.subr.bf16.mxu0 %v1109_v6 }
  0x90   :  { %950 = vmatpush3.bf16.msra.mxu0 %v1166_v7 }
  0x91   :  { %963 = vmatprep.subr.bf16.mxu0 %v1109_v6 }
  0xde   :  { %v224_v21 = vpop.f32.mrb[0].mxu1 }
  0xdf   :  { %v937_v22 = vpop.f32.mrb[1].mxu1 }
  0xe0   :  { %v227_v23 = vpop.f32.mrb[2].mxu1 }
  0xe1   :  { %v938_v24 = vpop.f32.mrb[3].mxu1 }
 0x15e   :  { %v1199_v25 = vpop.f32.mrb[0].mxu0 }
 0x15f   :  { %v139_v26 = vpop.f32.mrb[1].mxu0 }
 0x160   :  { %v230_v27 = vadd.f32 %v224_v21, %v139_v26  ;;  %v1201_v28 = vpop.f32.mrb[2].mxu0 }
 0x161   :  { %v142_v29 = vpop.f32.mrb[3].mxu0 }
 0x162   :  { %1016 = vtanh.f32 %v230_v27  ;;  %v870_v31 = vmul.f32 -1.442695, %v230_v27 }
 0x164   :  { %1018 = vpow2.f32 %v870_v31 }
 0x16c   :  { %v1017_v30 = vpop.eup %1016 }
 0x16d   :  { %240 = vrot.lane.b32.xlu0 %v1017_v30, %s1111_s1 }
 0x16e   :  { %v1019_v32 = vpop.eup %1018 }
 0x16f   :  { %v234_v33 = vadd.f32 1.0, %v1019_v32 }
 0x171   :  { %1020 = vrcp.f32 %v234_v33 }
 0x17b   :  { %v1021_v34 = vpop.eup %1020 }
 0x17c   :  { %v238_v37 = vmul.f32 0.0, %v1021_v34 }
 0x1df   :  { %v241_v35 = vpop.permute.xlu0 %240 }
 0x1e0   :  { %v243_v36 = vmul.f32 %v1021_v34, %v241_v35 }
 0x1e2   :  { %245 = vrot.lane.b32.xlu1 %v243_v36, %s1112_s2 }
 0x254   :  { %v246_v38 = vpop.permute.xlu1 %245 }
 0x255   :  { %v248_v39 = vadd.f32 %v246_v38, %v238_v37 }
 0x257   :  { %1022 = vtanh.f32 %v248_v39 }
 0x261   :  { %v1023_v40 = vpop.eup %1022 }
 0x262   :  { %251 = vrot.lane.b32.xlu0 %v1023_v40, %s1111_s1 }
 0x2d4   :  { %v252_v41 = vpop.permute.xlu0 %251 }
 0x2d5   :  { %v254_v42 = vmul.f32 %v1021_v34, %v252_v41 }
 0x2d7   :  { %v255_v43 = vpack.c.bf16 %v254_v42, %v254_v42 }
 0x2d9   :  { %257 = vrot.lane.b32.xlu1 %v255_v43, %s1112_s2 }
 0x34b   :  { %v258_v44 = vpop.permute.xlu1 %257 }
 0x34c   :  { %944 = vmatmul.mubr.msk.bf16.vlgmr.msra.gmra.mrb[4].mxu1 %vm186_vm6, %v258_v44 }
 0x34d   :  { %956 = vmatpush3.bf16.msra.mxu1 %v1159_v5  ;;  %959 = vmatprep.mubr.msk.bf16.mxu1 %vm1110_vm0, %v1109_v6 }
 0x34e   :  { %957 = vmatprep.subr.bf16.mxu1 %v1109_v6 }
 0x351   :  { %958 = vmatpush3.bf16.msra.mxu1 %v1166_v7 }
 0x352   :  { %971 = vmatprep.subr.bf16.mxu1 %v1109_v6 }
 0x41f   :  { %v296_v45 = vpop.f32.mrb[4].mxu1 }
 0x420   :  { %v302_v46 = vadd.f32 %v296_v45, %v142_v29  ;;  %v945_v47 = vpop.f32.mrb[5].mxu1 }
 0x421   :  { %v299_v48 = vpop.f32.mrb[6].mxu1 }
 0x422   :  { %1024 = vtanh.f32 %v302_v46  ;;  %v946_v49 = vpop.f32.mrb[7].mxu1  ;;  %v872_v51 = vmul.f32 -1.442695, %v302_v46 }
 0x424   :  { %1026 = vpow2.f32 %v872_v51 }
 0x42c   :  { %v1025_v50 = vpop.eup %1024 }
 0x42d   :  { %312 = vrot.lane.b32.xlu0 %v1025_v50, %s1111_s1 }
 0x42e   :  { %v1027_v52 = vpop.eup %1026 }
 0x42f   :  { %v306_v53 = vadd.f32 1.0, %v1027_v52 }
 0x431   :  { %1028 = vrcp.f32 %v306_v53 }
 0x43b   :  { %v1029_v54 = vpop.eup %1028 }
 0x43c   :  { %v310_v59 = vmul.f32 %v1029_v54, %v248_v39 }
 0x49f   :  { %v313_v55 = vpop.permute.xlu0 %312 }
 0x4a0   :  { %v315_v56 = vmul.f32 %v1029_v54, %v313_v55 }
 0x4a2   :  { %317 = vrot.lane.b32.xlu1 %v315_v56, %s1112_s2 }
 0x4a6   :  { %45 = vperm.xlu1 %1010, %v26_v57  }
 0x4aa   :  { %51 = vperm.xlu1 %1010, %v28_v58  }
 0x514   :  { %v318_v60 = vpop.permute.xlu1 %317 }
 0x515   :  { %v320_v61 = vadd.f32 %v318_v60, %v310_v59 }
 0x517   :  { %1030 = vtanh.f32 %v320_v61 }
 0x521   :  { %v1031_v62 = vpop.eup %1030 }
 0x522   :  { %323 = vrot.lane.b32.xlu0 %v1031_v62, %s1111_s1 }
 0x525   :  { %v46_v4 = vpop.permute.xlu1 %45 }
 0x526   :  { %48 = vperm.xlu0 %1009, %v27_v63   ;;  %vm60_vm7 = vcmp.eq.s32.totalorder %v46_v4, %v1183_v10 }
 0x527   :  { %v859_v11 = vsel %vm60_vm7, 1.0, %v1109_v6 }
 0x529   :  { %v52_v8 = vpop.permute.xlu1 %51 }
 0x52a   :  { %54 = vperm.xlu0 %1009, %v29_v0   ;;  %vm62_vm9 = vcmp.eq.s32.totalorder %v52_v8, %v1183_v10 }
 0x52b   :  { %v861_v15 = vsel %vm62_vm9, 1.0, %v1109_v6 }
 0x594   :  { %v324_v1 = vpop.permute.xlu0 %323 }
 0x595   :  { %v326_v2 = vmul.f32 %v1029_v54, %v324_v1 }
 0x597   :  { %v327_v3 = vpack.c.bf16 %v326_v2, %v326_v2 }
 0x599   :  { %329 = vrot.lane.b32.xlu1 %v327_v3, %s1112_s2 }
 0x5a5   :  { %v49_v9 = vpop.permute.xlu0 %48 }
 0x5a6   :  { %vm61_vm8 = vcmp.eq.s32.totalorder %v49_v9, %v1183_v10 }
 0x5a7   :  { %v860_v12 = vsel %vm61_vm8, 1.0, %v1109_v6 }
 0x5a8   :  { %v82_v13 = vpack.c.bf16 %v860_v12, %v859_v11 }
 0x5a9   :  { %v55_v14 = vpop.permute.xlu0 %54 }
 0x5aa   :  { %vm63_vm10 = vcmp.eq.s32.totalorder %v55_v14, %v1183_v10  ;;  %927 = vmatprep.mubr.msk.bf16.mxu0 %vm92_vm5, %v82_v13 }
 0x5ab   :  { %v862_v16 = vsel %vm63_vm10, 1.0, %v1109_v6 }
 0x5ac   :  { %v83_v17 = vpack.c.bf16 %v862_v16, %v861_v15 }
 0x5ae   :  { %928 = vmatmul.mubr.msk.bf16.gmra.mrb[4].mxu0 %vm92_vm5, %v83_v17 }
 0x5af   :  { %951 = vmatprep.mubr.msk.bf16.mxu0 %vm1110_vm0, %v1109_v6 }
 0x60b   :  { %v330_v18 = vpop.permute.xlu1 %329 }
 0x60c   :  { %952 = vmatmul.mubr.msk.bf16.vlgmr.msra.gmra.mrb[8].mxu0 %vm186_vm6, %v330_v18 }
 0x60d   :  { %964 = vmatpush3.bf16.msra.mxu0 %v1159_v5  ;;  %967 = vmatprep.mubr.msk.bf16.mxu0 %vm1110_vm0, %v1109_v6 }
 0x60e   :  { %965 = vmatprep.subr.bf16.mxu0 %v1109_v6 }
 0x611   :  { %966 = vmatpush3.bf16.msra.mxu0 %v1166_v7 }
 0x612   :  { %979 = vmatprep.subr.bf16.mxu0 %v1109_v6 }
 0x681   :  { %v1249_v10 = vpop.f32.mrb[4].mxu0 }
 0x682   :  { %v1251_v19 = vpop.f32.mrb[5].mxu0 }
 0x683   :  { %v1253_v20 = vpop.f32.mrb[6].mxu0 }
 0x684   :  { %v1255_v21 = vpop.f32.mrb[7].mxu0 }
 0x6df   :  { %v368_v22 = vpop.f32.mrb[8].mxu0 }
 0x6e0   :  { %v374_v23 = vadd.f32 %v1199_v25, %v368_v22  ;;  %v953_v24 = vpop.f32.mrb[9].mxu0 }
 0x6e1   :  { %v371_v26 = vpop.f32.mrb[10].mxu0 }
 0x6e2   :  { %1032 = vtanh.f32 %v374_v23  ;;  %v954_v27 = vpop.f32.mrb[11].mxu0  ;;  %v874_v30 = vmul.f32 -1.442695, %v374_v23 }
 0x6e4   :  { %1034 = vpow2.f32 %v874_v30 }
 0x6ec   :  { %v1033_v29 = vpop.eup %1032 }
 0x6ed   :  { %384 = vrot.lane.b32.xlu0 %v1033_v29, %s1111_s1 }
 0x6ee   :  { %v1035_v31 = vpop.eup %1034 }
 0x6ef   :  { %v378_v32 = vadd.f32 1.0, %v1035_v31 }
 0x6f1   :  { %1036 = vrcp.f32 %v378_v32 }
 0x6fb   :  { %v1037_v33 = vpop.eup %1036 }
 0x6fc   :  { %v382_v36 = vmul.f32 %v1037_v33, %v320_v61 }
 0x75f   :  { %v385_v34 = vpop.permute.xlu0 %384 }
 0x760   :  { %v387_v35 = vmul.f32 %v1037_v33, %v385_v34 }
 0x762   :  { %389 = vrot.lane.b32.xlu1 %v387_v35, %s1112_s2 }
 0x7d4   :  { %v390_v37 = vpop.permute.xlu1 %389 }
 0x7d5   :  { %v392_v25 = vadd.f32 %v390_v37, %v382_v36 }
 0x7d7   :  { %1038 = vtanh.f32 %v392_v25 }
 0x7e1   :  { %v1039_v38 = vpop.eup %1038 }
 0x7e2   :  { %395 = vrot.lane.b32.xlu0 %v1039_v38, %s1111_s1 }
 0x854   :  { %v396_v39 = vpop.permute.xlu0 %395 }
 0x855   :  { %v398_v40 = vmul.f32 %v1037_v33, %v396_v39 }
 0x857   :  { %v399_v41 = vpack.c.bf16 %v398_v40, %v398_v40 }
 0x859   :  { %401 = vrot.lane.b32.xlu1 %v399_v41, %s1112_s2 }
 0x8cb   :  { %v402_v42 = vpop.permute.xlu1 %401 }
 0x8cc   :  { %960 = vmatmul.mubr.msk.bf16.vlgmr.msra.gmra.mrb[8].mxu1 %vm186_vm6, %v402_v42 }
 0x8cd   :  { %972 = vmatpush3.bf16.msra.mxu1 %v1159_v5  ;;  %975 = vmatprep.mubr.msk.bf16.mxu1 %vm1110_vm0, %v1109_v6 }
 0x8ce   :  { %973 = vmatprep.subr.bf16.mxu1 %v1109_v6 }
 0x8d1   :  { %974 = vmatpush3.bf16.msra.mxu1 %v1166_v7 }
 0x8d2   :  { %987 = vmatprep.subr.bf16.mxu1 %v1109_v6 }
 0x99f   :  { %v440_v43 = vpop.f32.mrb[8].mxu1 }
 0x9a0   :  { %v446_v44 = vadd.f32 %v1201_v28, %v440_v43  ;;  %v961_v45 = vpop.f32.mrb[9].mxu1 }
 0x9a1   :  { %v443_v46 = vpop.f32.mrb[10].mxu1 }
 0x9a2   :  { %1040 = vtanh.f32 %v446_v44  ;;  %v962_v47 = vpop.f32.mrb[11].mxu1  ;;  %v876_v49 = vmul.f32 -1.442695, %v446_v44 }
 0x9a4   :  { %1042 = vpow2.f32 %v876_v49 }
 0x9ac   :  { %v1041_v48 = vpop.eup %1040 }
 0x9ad   :  { %456 = vrot.lane.b32.xlu0 %v1041_v48, %s1111_s1 }
 0x9ae   :  { %v1043_v50 = vpop.eup %1042 }
 0x9af   :  { %v450_v51 = vadd.f32 1.0, %v1043_v50 }
 0x9b1   :  { %1044 = vrcp.f32 %v450_v51 }
 0x9bb   :  { %v1045_v52 = vpop.eup %1044 }
 0x9bc   :  { %v454_v55 = vmul.f32 %v1045_v52, %v392_v25 }
 0xa1f   :  { %v457_v53 = vpop.permute.xlu0 %456 }
 0xa20   :  { %v459_v54 = vmul.f32 %v1045_v52, %v457_v53 }
 0xa22   :  { %461 = vrot.lane.b32.xlu1 %v459_v54, %s1112_s2 }
 0xa94   :  { %v462_v56 = vpop.permute.xlu1 %461 }
 0xa95   :  { %v464_v28 = vadd.f32 %v462_v56, %v454_v55 }
 0xa97   :  { %1046 = vtanh.f32 %v464_v28 }
 0xaa1   :  { %v1047_v57 = vpop.eup %1046 }
 0xaa2   :  { %467 = vrot.lane.b32.xlu0 %v1047_v57, %s1111_s1 }
 0xb14   :  { %v468_v58 = vpop.permute.xlu0 %467 }
 0xb15   :  { %v470_v59 = vmul.f32 %v1045_v52, %v468_v58 }
 0xb17   :  { %v471_v60 = vpack.c.bf16 %v470_v59, %v470_v59 }
 0xb19   :  { %473 = vrot.lane.b32.xlu1 %v471_v60, %s1112_s2 }
 0xb8b   :  { %v474_v61 = vpop.permute.xlu1 %473 }
 0xb8c   :  { %968 = vmatmul.mubr.msk.bf16.vlgmr.msra.gmra.mrb[12].mxu0 %vm186_vm6, %v474_v61 }
 0xb8d   :  { %980 = vmatpush3.bf16.msra.mxu0 %v1159_v5  ;;  %983 = vmatprep.mubr.msk.bf16.mxu0 %vm1110_vm0, %v1109_v6 }
 0xb8e   :  { %981 = vmatprep.subr.bf16.mxu0 %v1109_v6 }
 0xb91   :  { %982 = vmatpush3.bf16.msra.mxu0 %v1166_v7 }
 0xb92   :  { %995 = vmatprep.subr.bf16.mxu0 %v1109_v6 }
 0xc5f   :  { %v512_v62 = vpop.f32.mrb[12].mxu0 }
 0xc60   :  { %v518_v63 = vadd.f32 %v512_v62, %v1251_v19  ;;  %v969_v0 = vpop.f32.mrb[13].mxu0 }
 0xc61   :  { %v515_v1 = vpop.f32.mrb[14].mxu0 }
 0xc62   :  { %1048 = vtanh.f32 %v518_v63  ;;  %v970_v2 = vpop.f32.mrb[15].mxu0  ;;  %v878_v4 = vmul.f32 -1.442695, %v518_v63 }
 0xc64   :  { %1050 = vpow2.f32 %v878_v4 }
 0xc6c   :  { %v1049_v3 = vpop.eup %1048 }
 0xc6d   :  { %528 = vrot.lane.b32.xlu0 %v1049_v3, %s1111_s1 }
 0xc6e   :  { %v1051_v8 = vpop.eup %1050 }
 0xc6f   :  { %v522_v9 = vadd.f32 1.0, %v1051_v8 }
 0xc71   :  { %1052 = vrcp.f32 %v522_v9 }
 0xc7b   :  { %v1053_v11 = vpop.eup %1052 }
 0xc7c   :  { %v526_v14 = vmul.f32 %v1053_v11, %v464_v28 }
 0xcdf   :  { %v529_v12 = vpop.permute.xlu0 %528 }
 0xce0   :  { %v531_v13 = vmul.f32 %v1053_v11, %v529_v12 }
 0xce2   :  { %533 = vrot.lane.b32.xlu1 %v531_v13, %s1112_s2 }
 0xd54   :  { %v534_v15 = vpop.permute.xlu1 %533 }
 0xd55   :  { %v536_v16 = vadd.f32 %v534_v15, %v526_v14  ;;  %v1014_v14 = vld [vmem:[%s1340_s3] sm:$0xff]   ;;  %v1015_v15 = vld [vmem:[%s1340_s3 + $0x8] sm:$0xff]   ;;  %s1113_s3 = smov [#allocation2]  }
 0xd57   :  { %1054 = vtanh.f32 %v536_v16 }
 0xd61   :  { %v1055_v17 = vpop.eup %1054 }
 0xd62   :  { %539 = vrot.lane.b32.xlu0 %v1055_v17, %s1111_s1 }
 0xdd4   :  { %v540_v18 = vpop.permute.xlu0 %539 }
 0xdd5   :  { %v542_v19 = vmul.f32 %v1053_v11, %v540_v18 }
 0xdd7   :  { %v543_v22 = vpack.c.bf16 %v542_v19, %v542_v19 }
 0xdd9   :  { %545 = vrot.lane.b32.xlu1 %v543_v22, %s1112_s2 }
 0xe4b   :  { %v546_v23 = vpop.permute.xlu1 %545 }
 0xe4c   :  { %976 = vmatmul.mubr.msk.bf16.vlgmr.msra.gmra.mrb[12].mxu1 %vm186_vm6, %v546_v23  ;;  %v885_v23 = vld [vmem:[%s1341_s4] ss:$0 sm:$0xff]  ;;  %s847_s4 = sshll.u32 %s1113_s3, 4  ;;  %s848_s4 = int_to_ptr.vmem [resolvable:$true] %s847_s4 }
 0xe4d   :  { %988 = vmatpush3.bf16.msra.mxu1 %v1159_v5  ;;  %991 = vmatprep.mubr.msk.bf16.mxu1 %vm1110_vm0, %v1109_v6  ;;  %s1084_s20 = scalar_lea.vmem %s848_s4, 128  ;;  %p1089_p1 = scmp.lt.s32.totalorder %s848_s4, %s848_s4 }
 0xe4e   :  { %989 = vmatprep.subr.bf16.mxu1 %v1109_v6  ;;  %p1085_p0 = scmp.ne.s32.totalorder %s848_s4, %s1084_s20  ;;  %p1090_p2 = scmp.lt.s32.totalorder %s1084_s20, %s1084_s20 }
 0xe50   :  { %p1091_p3 = por %p1090_p2, %p1089_p1 }
 0xe51   :  { %990 = vmatpush3.bf16.msra.mxu1 %v1166_v7 }
 0xe52   :  { %p1092_p4 = pnand %p1091_p3, %p1085_p0 }
 0xf1f   :  { %v584_v24 = vpop.f32.mrb[12].mxu1 }
 0xf20   :  { %v590_v26 = vadd.f32 %v584_v24, %v1255_v21  ;;  %v977_v27 = vpop.f32.mrb[13].mxu1 }
 0xf21   :  { %v587_v29 = vpop.f32.mrb[14].mxu1 }
 0xf22   :  { %1056 = vtanh.f32 %v590_v26  ;;  %v978_v30 = vpop.f32.mrb[15].mxu1  ;;  %v880_v32 = vmul.f32 -1.442695, %v590_v26 }
 0xf24   :  { %1058 = vpow2.f32 %v880_v32 }
 0xf2c   :  { %v1057_v31 = vpop.eup %1056 }
 0xf2d   :  { %600 = vrot.lane.b32.xlu0 %v1057_v31, %s1111_s1 }
 0xf2e   :  { %v1059_v5 = vpop.eup %1058 }
 0xf2f   :  { %v594_v33 = vadd.f32 1.0, %v1059_v5 }
 0xf31   :  { %1060 = vrcp.f32 %v594_v33 }
 0xf3b   :  { %v1061_v34 = vpop.eup %1060 }
 0xf3c   :  { %v598_v7 = vmul.f32 %v1061_v34, %v536_v16 }
 0xf9f   :  { %v601_v35 = vpop.permute.xlu0 %600 }
 0xfa0   :  { %v603_v36 = vmul.f32 %v1061_v34, %v601_v35 }
 0xfa2   :  { %605 = vrot.lane.b32.xlu1 %v603_v36, %s1112_s2 }
0x1014   :  { %v606_v37 = vpop.permute.xlu1 %605 }
0x1015   :  { %v608_v21 = vadd.f32 %v606_v37, %v598_v7 }
0x1017   :  { %1062 = vtanh.f32 %v608_v21 }
0x1021   :  { %v1063_v25 = vpop.eup %1062 }
0x1022   :  { %611 = vrot.lane.b32.xlu0 %v1063_v25, %s1111_s1 }
0x1094   :  { %v612_v38 = vpop.permute.xlu0 %611 }
0x1095   :  { %v614_v39 = vmul.f32 %v1061_v34, %v612_v38 }
0x1097   :  { %v615_v40 = vpack.c.bf16 %v614_v39, %v614_v39 }
0x1099   :  { %617 = vrot.lane.b32.xlu1 %v615_v40, %s1112_s2 }
0x110b   :  { %v618_v41 = vpop.permute.xlu1 %617 }
0x110c   :  { %984 = vmatmul.mubr.msk.bf16.vlgmr.msra.gmra.mrb[16].mxu0 %vm186_vm6, %v618_v41 }
0x110d   :  { %999 = vmatprep.mubr.msk.bf16.mxu0 %vm1110_vm0, %v1109_v6  ;;  %996 = vmatpush3.bf16.msra.mxu0 %v1014_v14 }
0x110e   :  { %997 = vmatprep.subr.bf16.mxu0 %v1109_v6 }
0x1111   :  { %998 = vmatpush3.bf16.msra.mxu0 %v1015_v15 }
0x11df   :  { %v656_v42 = vpop.f32.mrb[16].mxu0 }
0x11e0   :  { %v662_v43 = vadd.f32 %v1249_v10, %v656_v42  ;;  %v985_v44 = vpop.f32.mrb[17].mxu0 }
0x11e1   :  { %v659_v45 = vpop.f32.mrb[18].mxu0 }
0x11e2   :  { %1064 = vtanh.f32 %v662_v43  ;;  %v986_v46 = vpop.f32.mrb[19].mxu0  ;;  %v882_v48 = vmul.f32 -1.442695, %v662_v43 }
0x11e4   :  { %1066 = vpow2.f32 %v882_v48 }
0x11ec   :  { %v1065_v47 = vpop.eup %1064 }
0x11ed   :  { %672 = vrot.lane.b32.xlu0 %v1065_v47, %s1111_s1 }
0x11ee   :  { %v1067_v49 = vpop.eup %1066 }
0x11ef   :  { %v666_v50 = vadd.f32 1.0, %v1067_v49 }
0x11f1   :  { %1068 = vrcp.f32 %v666_v50 }
0x11fb   :  { %v1069_v51 = vpop.eup %1068 }
0x11fc   :  { %v670_v54 = vmul.f32 %v1069_v51, %v608_v21 }
0x125f   :  { %v673_v52 = vpop.permute.xlu0 %672 }
0x1260   :  { %v675_v53 = vmul.f32 %v1069_v51, %v673_v52 }
0x1262   :  { %677 = vrot.lane.b32.xlu1 %v675_v53, %s1112_s2 }
0x12d4   :  { %v678_v55 = vpop.permute.xlu1 %677 }
0x12d5   :  { %v680_v10 = vadd.f32 %v678_v55, %v670_v54 }
0x12d7   :  { %1070 = vtanh.f32 %v680_v10 }
0x12e1   :  { %v1071_v56 = vpop.eup %1070 }
0x12e2   :  { %683 = vrot.lane.b32.xlu0 %v1071_v56, %s1111_s1 }
0x1354   :  { %v684_v28 = vpop.permute.xlu0 %683 }
0x1355   :  { %v686_v57 = vmul.f32 %v1069_v51, %v684_v28 }
0x1357   :  { %v687_v58 = vpack.c.bf16 %v686_v57, %v686_v57 }
0x1359   :  { %689 = vrot.lane.b32.xlu1 %v687_v58, %s1112_s2 }
0x13cb   :  { %v690_v59 = vpop.permute.xlu1 %689 }
0x13cc   :  { %992 = vmatmul.mubr.msk.bf16.vlgmr.msra.gmra.mrb[16].mxu1 %vm186_vm6, %v690_v59 }
0x149f   :  { %v728_v60 = vpop.f32.mrb[16].mxu1 }
0x14a0   :  { %v734_v61 = vadd.f32 %v1253_v20, %v728_v60  ;;  %v993_v62 = vpop.f32.mrb[17].mxu1 }
0x14a1   :  { %v731_v63 = vpop.f32.mrb[18].mxu1 }
0x14a2   :  { %1072 = vtanh.f32 %v734_v61  ;;  %v994_v0 = vpop.f32.mrb[19].mxu1  ;;  %v884_v2 = vmul.f32 -1.442695, %v734_v61 }
0x14a4   :  { %1074 = vpow2.f32 %v884_v2 }
0x14ac   :  { %v1073_v1 = vpop.eup %1072 }
0x14ad   :  { %744 = vrot.lane.b32.xlu0 %v1073_v1, %s1111_s1 }
0x14ae   :  { %v1075_v3 = vpop.eup %1074 }
0x14af   :  { %v738_v4 = vadd.f32 1.0, %v1075_v3 }
0x14b1   :  { %1076 = vrcp.f32 %v738_v4 }
0x14bb   :  { %v1077_v8 = vpop.eup %1076 }
0x14bc   :  { %v742_v12 = vmul.f32 %v1077_v8, %v680_v10 }
0x151f   :  { %v745_v9 = vpop.permute.xlu0 %744 }
0x1520   :  { %v747_v11 = vmul.f32 %v1077_v8, %v745_v9 }
0x1522   :  { %749 = vrot.lane.b32.xlu1 %v747_v11, %s1112_s2 }
0x1594   :  { %v750_v13 = vpop.permute.xlu1 %749 }
0x1595   :  { %v752_v20 = vadd.f32 %v750_v13, %v742_v12 }
0x1597   :  { %1078 = vtanh.f32 %v752_v20 }
0x15a1   :  { %v1079_v16 = vpop.eup %1078 }
0x15a2   :  { %755 = vrot.lane.b32.xlu0 %v1079_v16, %s1111_s1 }
0x1614   :  { %v756_v17 = vpop.permute.xlu0 %755 }
0x1615   :  { %v758_v18 = vmul.f32 %v1077_v8, %v756_v17 }
0x1617   :  { %v759_v19 = vpack.c.bf16 %v758_v18, %v758_v18 }
0x1619   :  { %772 = vrot.lane.b32.xlu1 %v759_v19, %s1112_s2 }
0x168b   :  { %v773_v22 = vpop.permute.xlu1 %772 }
0x168c   :  { %1000 = vmatmul.mubr.msk.bf16.vlgmr.msra.gmra.mrb[20].mxu0 %vm186_vm6, %v773_v22 }
0x175f   :  { %v823_v24 = vpop.f32.mrb[20].mxu0 }
0x1760   :  { %v824_v26 = vadd.f32 %v885_v23, %v823_v24  ;;  %v1001_v27 = vpop.f32.mrb[21].mxu0 }
0x1761   :  { %v826_v6 = vpop.f32.mrb[22].mxu0 }
0x1762   :  { %v1002_v29 = vpop.f32.mrb[23].mxu0  ;;  %v829_v30 = vsel %vm92_vm5, %v824_v26, -inf }
0x1763   :  { %830 = vmax.xlane.f32.xlu0 %v829_v30 }
0x17f0   :  { %v831_v31 = vpop.xlane.xlu0 %830 }
0x17f1   :  { %v832_v32 = vsub.f32 %v824_v26, %v831_v31 }
0x17f3   :  { %v833_v5 = vmul.f32 1.442695, %v832_v32 }
0x17f5   :  { %1080 = vpow2.f32 %v833_v5 }
0x17ff   :  { %v1081_v33 = vpop.eup %1080 }
0x1800   :  { %v835_v34 = vsel %vm92_vm5, %v1081_v33, 0.0 }
0x1801   :  { %836 = vadd.xlane.f32.xlu1 %v835_v34 }
0x188e   :  { %v837_v35 = vpop.xlane.xlu1 %836 }
0x188f   :  { %1082 = vrcp.f32 %v837_v35 }
0x1899   :  { %v1083_v36 = vpop.eup %1082 }
0x189a   :  { %v839_v7 = vmul.f32 %v1083_v36, %v1081_v33 }
0x189c   :  { %840 = vst.msk [vmem:[#allocation2] sm:$0xff] %vm92_vm5, %v839_v7 }
0x189d   :  { %1095 = shalt.err (!%p1092_p4)
}
0x189e   :  { %s1096_s23 = scalar_lea.hbm %s1342_s5, 128 }
0x189f   :  { %p1097_p5 = scmp.ne.s32.totalorder %s1342_s5, %s1096_s23  ;;  %p1100_p6 = scmp.lt.u32.totalorder %s1096_s23, %s1342_s5 }
0x18a1   :  { %p1102_p7 = pnand %p1100_p6, %p1097_p5 }
0x18a3   :  { %1105 = shalt.err (!%p1102_p7)
}
0x18a4   :  { %850 = dma.vmem_to_hbm [thread:$0]  %s848_s4, 128, %s1342_s5, [#allocation3]  }
0x18a5   :  { %1106 = dma.done.wait [#allocation3], 128  }
0x18a6   :  { %1107 = vsyncadd [#allocation3], 4294967168 }
0x18a7   :  { %854 = vsyncpa [#allocation3], 1 }

</bundles_post_ra>
